<compile_context>
chip_gen: v7x
topology: tpu7x:2x2x1
jax: 0.10.0
libtpu: 0.0.40
codegen_flags: <defaults>
</compile_context>

<pallas_src>
import jax
import jax.numpy as jnp
from jax.experimental import pallas as pl
from jax.experimental.pallas import tpu as pltpu


# --------------------------------------------------------------------------
# fused 2-layer GIN kernel (Bt packed "super graphs" of M nodes per grid step)
# --------------------------------------------------------------------------
def _gin_layer(adj_bf, x, w, b):
    """One GINConv layer: ReLU((A_hat @ x) @ W + b), bf16 MXU inputs, f32 acc."""
    Bt, M, d_a = x.shape
    d_b = w.shape[-1]
    w_bf = w.astype(jnp.bfloat16)
    x_bf = x.astype(jnp.bfloat16)
    if d_a <= d_b:
        # Aggregate in the narrow input dim first: (A_hat @ X) @ W
        agg = jnp.einsum("bnm,bmd->bnd", adj_bf, x_bf,
                         preferred_element_type=jnp.float32)
        y = jnp.dot(agg.reshape(Bt * M, d_a).astype(jnp.bfloat16), w_bf,
                    preferred_element_type=jnp.float32).reshape(Bt, M, d_b)
    else:
        # Project down first, then aggregate in the narrow output dim: A_hat @ (X @ W)
        z = jnp.dot(x_bf.reshape(Bt * M, d_a), w_bf,
                    preferred_element_type=jnp.float32)
        y = jnp.einsum("bnm,bmd->bnd", adj_bf,
                       z.reshape(Bt, M, d_b).astype(jnp.bfloat16),
                       preferred_element_type=jnp.float32)
    return jnp.maximum(y + b, 0.0)


def gin_kernel(adj_ref, x_ref, w1_ref, b1_ref, w2_ref, b2_ref, o_ref):
    adj = adj_ref[...]                                    # (Bt, M, M) bf16, A + I baked in
    h = _gin_layer(adj, x_ref[...], w1_ref[...], b1_ref[...])
    o_ref[...] = _gin_layer(adj, h, w2_ref[...], b2_ref[...])


# --------------------------------------------------------------------------
# VMEM-budget-driven block sizing
# --------------------------------------------------------------------------
def _round_up(v, m):
    return -(-v // m) * m


def _vmem_capacity_bytes():
    try:
        cap = int(getattr(pltpu.get_tpu_info(), "vmem_capacity_bytes", 0))
        if cap > 0:
            return cap
    except Exception:
        pass
    return 64 * 1024 * 1024          # conservative default: v7x per-TensorCore VMEM


def _per_step_vmem_bytes(bt, M, d_in, d_hidden, d_out):
    """Rough per-grid-step VMEM footprint with (8,128) tile padding + double buffers."""
    lane = lambda d: _round_up(d, 128)
    sub = lambda s: _round_up(s, 8)
    adj_b = bt * sub(M) * lane(M) * 2                     # bf16
    x_b = bt * sub(M) * lane(d_in) * 2                    # bf16
    o_b = bt * sub(M) * lane(d_out) * 4                   # f32
    w_b = (sub(d_in) * lane(d_hidden) + sub(1) * lane(d_hidden)
           + sub(d_hidden) * lane(d_out) + sub(1) * lane(d_out)) * 4
    io = 2 * (adj_b + x_b + o_b + w_b)                    # double-buffered pipeline
    # live intermediates (agg1, h, agg2, out + bf16 casts), f32-padded lanes
    inter = bt * sub(M) * (lane(d_in) + 2 * lane(d_hidden) + 2 * lane(d_out)) * 6
    return io + inter


def _choose_block_batch(G, M, d_in, d_hidden, d_out, budget):
    cap = max(1, G // 4)   # keep >= 4 grid steps when possible (2 TCs on v7x + pipelining)
    best = 1
    for bt in range(1, cap + 1):
        if G % bt == 0 and _per_step_vmem_bytes(bt, M, d_in, d_hidden, d_out) <= budget:
            best = bt
    return best


# --------------------------------------------------------------------------
# wrapper
# --------------------------------------------------------------------------
@jax.jit
def gin_forward(adj, x, params):
    """adj: (B, N, N) dense 0/1 adjacency, x: (B, N, d_in). Returns (B, N, d_out)."""
    B, N, d_in = x.shape
    d_hidden = params["w1"].shape[1]
    d_out = params["w2"].shape[1]

    # ---- wrapper-side layout plumbing ------------------------------------
    # Fold the self term once: A_hat = A + (1 + eps) * I with eps = 0.
    adj_hat = adj.astype(jnp.float32) + jnp.eye(N, dtype=jnp.float32)

    # Pack P graphs into one block-diagonal super graph of M = P*N (=128) nodes.
    P = 128 // N if (N < 128 and 128 % N == 0) else 1
    M = P * N
    B_pad = _round_up(B, P)
    G = B_pad // P
    if B_pad != B:
        adj_hat = jnp.concatenate(
            [adj_hat, jnp.zeros((B_pad - B, N, N), adj_hat.dtype)], axis=0)
        x = jnp.concatenate(
            [x, jnp.zeros((B_pad - B, N, d_in), x.dtype)], axis=0)

    eye_p = jnp.eye(P, dtype=adj_hat.dtype)
    adj_bd = jnp.einsum("pq,gpnm->gpnqm", eye_p,
                        adj_hat.reshape(G, P, N, N)).reshape(G, M, M)
    adj_bd = adj_bd.astype(jnp.bfloat16)                  # halve the adjacency HBM stream
    x_bd = x.astype(jnp.float32).reshape(G, M, d_in).astype(jnp.bfloat16)

    # ---- block sizing / compiler params -----------------------------------
    vmem_cap = _vmem_capacity_bytes()
    vmem_limit = max(16 * 1024 * 1024,
                     int(min(vmem_cap * 3 // 4, 112 * 1024 * 1024)))
    Bt = _choose_block_batch(G, M, d_in, d_hidden, d_out, vmem_limit // 2)
    grid = (G // Bt,)

    flops = (2 * G * M * M * (d_in + d_hidden)
             + 2 * G * M * (d_in * d_hidden + d_hidden * d_out))
    bytes_accessed = (adj_bd.size * 2 + x_bd.size * 2 + G * M * d_out * 4
                      + (d_in * d_hidden + d_hidden + d_hidden * d_out + d_out) * 4)

    out = pl.pallas_call(
        gin_kernel,
        out_shape=jax.ShapeDtypeStruct((G, M, d_out), jnp.float32),
        grid=grid,
        in_specs=[
            pl.BlockSpec((Bt, M, M), lambda g: (g, 0, 0)),
            pl.BlockSpec((Bt, M, d_in), lambda g: (g, 0, 0)),
            pl.BlockSpec((d_in, d_hidden), lambda g: (0, 0)),
            pl.BlockSpec((1, d_hidden), lambda g: (0, 0)),
            pl.BlockSpec((d_hidden, d_out), lambda g: (0, 0)),
            pl.BlockSpec((1, d_out), lambda g: (0, 0)),
        ],
        out_specs=pl.BlockSpec((Bt, M, d_out), lambda g: (g, 0, 0)),
        compiler_params=pltpu.CompilerParams(
            dimension_semantics=("parallel",),
            vmem_limit_bytes=int(vmem_limit)),
        cost_estimate=pl.CostEstimate(
            flops=int(flops), transcendentals=0,
            bytes_accessed=int(bytes_accessed)),
    )(adj_bd, x_bd, params["w1"], params["b1"], params["w2"], params["b2"])

    return out.reshape(B_pad, N, d_out)[:B]


# --------------------------------------------------------------------------
# parameters (PyTorch nn.Linear-style init, weights stored (in, out))
# --------------------------------------------------------------------------
def init_params(key, d_in, d_hidden, d_out):
    k1, k2, k3, k4 = jax.random.split(key, 4)

    def lin_w(k, fan_in, fan_out):
        s = 1.0 / jnp.sqrt(jnp.float32(fan_in))
        return jax.random.uniform(k, (fan_in, fan_out), jnp.float32, -1.0, 1.0) * s

    def lin_b(k, fan_in, fan_out):
        s = 1.0 / jnp.sqrt(jnp.float32(fan_in))
        return jax.random.uniform(k, (1, fan_out), jnp.float32, -1.0, 1.0) * s

    return {"w1": lin_w(k1, d_in, d_hidden), "b1": lin_b(k2, d_in, d_hidden),
            "w2": lin_w(k3, d_hidden, d_out), "b2": lin_b(k4, d_hidden, d_out)}


# --------------------------------------------------------------------------
# pure-JAX references (f32, and bf16-input to mirror the kernel's MXU dtypes)
# --------------------------------------------------------------------------
def gin_reference(adj, x, params, dot_dtype=jnp.float32):
    adj_hat = (adj + jnp.eye(adj.shape[-1], dtype=adj.dtype)).astype(dot_dtype)

    def layer(xx, w, b):
        agg = jnp.einsum("bnm,bmd->bnd", adj_hat, xx.astype(dot_dtype),
                         preferred_element_type=jnp.float32)
        y = jnp.einsum("bnd,de->bne", agg.astype(dot_dtype), w.astype(dot_dtype),
                       preferred_element_type=jnp.float32) + b
        return jnp.maximum(y, 0.0)

    h = layer(x, params["w1"], params["b1"])
    return layer(h, params["w2"], params["b2"])


if __name__ == "__main__":
    key = jax.random.PRNGKey(0)
    kp, kd = jax.random.split(key)

    # small shapes consistent with the module
    B, N = 8, 8                      # graphs per batch, nodes per graph
    d_in, d_hidden, d_out = 8, 16, 32

    params = init_params(kp, d_in, d_hidden, d_out)

    ka, kx = jax.random.split(kd)
    upper = (jax.random.uniform(ka, (B, N, N)) > 0.6).astype(jnp.float32)
    upper = jnp.triu(upper, k=1)
    adj = upper + jnp.transpose(upper, (0, 2, 1))   # symmetric 0/1, no self loops
    x = jax.random.normal(kx, (B, N, d_in), dtype=jnp.float32)

    out = gin_forward(adj, x, params)
    out = jax.block_until_ready(out)

    assert out.shape == (B, N, d_out), out.shape
    assert bool(jnp.all(jnp.isfinite(out)))

    ref_bf16 = gin_reference(adj, x, params, dot_dtype=jnp.bfloat16)
    assert bool(jnp.allclose(out, ref_bf16, atol=2e-3, rtol=2e-3)), float(
        jnp.max(jnp.abs(out - ref_bf16)))
    ref_f32 = gin_reference(adj, x, params, dot_dtype=jnp.float32)
    assert bool(jnp.allclose(out, ref_f32, atol=5e-1, rtol=1e-1)), float(
        jnp.max(jnp.abs(out - ref_f32)))

    print("KERNEL_OK")
</pallas_src>

<mosaic_0001>
module attributes {stable_mosaic.version = 11 : i64} {
  func.func @gin_kernel(%arg0: i32, %arg1: memref<1x128x128xbf16, #tpu.memory_space<vmem>>, %arg2: memref<1x128x8xbf16, #tpu.memory_space<vmem>>, %arg3: memref<8x16xf32, #tpu.memory_space<vmem>>, %arg4: memref<1x16xf32, #tpu.memory_space<vmem>>, %arg5: memref<16x32xf32, #tpu.memory_space<vmem>>, %arg6: memref<1x32xf32, #tpu.memory_space<vmem>>, %arg7: memref<1x128x32xf32, #tpu.memory_space<vmem>>) attributes {dimension_semantics = [#tpu.dimension_semantics<parallel>], iteration_bounds = array<i64: 1>, scalar_prefetch = 0 : i64, scratch_operands = 0 : i64, tpu.core_type = #tpu.core_type<tc>, window_params = [{transform_indices = @transform_0, window_bounds = array<i64: 1, 128, 128>}, {transform_indices = @transform_1, window_bounds = array<i64: 1, 128, 8>}, {pipeline_mode = #tpu.pipeline_mode<synchronous>, transform_indices = @transform_2, window_bounds = array<i64: 8, 16>}, {pipeline_mode = #tpu.pipeline_mode<synchronous>, transform_indices = @transform_3, window_bounds = array<i64: 1, 16>}, {pipeline_mode = #tpu.pipeline_mode<synchronous>, transform_indices = @transform_4, window_bounds = array<i64: 16, 32>}, {pipeline_mode = #tpu.pipeline_mode<synchronous>, transform_indices = @transform_5, window_bounds = array<i64: 1, 32>}, {transform_indices = @transform_6, window_bounds = array<i64: 1, 128, 32>}]} {
    %c0 = arith.constant 0 : index
    %c0_0 = arith.constant 0 : index
    %c0_1 = arith.constant 0 : index
    %0 = vector.load %arg1[%c0, %c0_0, %c0_1] : memref<1x128x128xbf16, #tpu.memory_space<vmem>>, vector<1x128x128xbf16>
    %c0_2 = arith.constant 0 : index
    %c0_3 = arith.constant 0 : index
    %c0_4 = arith.constant 0 : index
    %1 = vector.load %arg2[%c0_2, %c0_3, %c0_4] : memref<1x128x8xbf16, #tpu.memory_space<vmem>>, vector<1x128x8xbf16>
    %c0_5 = arith.constant 0 : index
    %c0_6 = arith.constant 0 : index
    %2 = vector.load %arg3[%c0_5, %c0_6] : memref<8x16xf32, #tpu.memory_space<vmem>>, vector<8x16xf32>
    %c0_7 = arith.constant 0 : index
    %c0_8 = arith.constant 0 : index
    %3 = vector.load %arg4[%c0_7, %c0_8] : memref<1x16xf32, #tpu.memory_space<vmem>>, vector<1x16xf32>
    %4 = arith.truncf %2 : vector<8x16xf32> to vector<8x16xbf16>
    "tpu.trace_start"() <{level = 10 : i32, message = "bnm,bmd->bnd"}> : () -> ()
    %cst = arith.constant dense<0.000000e+00> : vector<1x128x8xf32>
    %5 = tpu.matmul %0, %1, %cst {dimension_numbers = #tpu.dot_dimension_numbers<[2], [1], [1], [2], [0, 0, 0, 1, 1, 2], [0], [0]>} : vector<1x128x128xbf16>, vector<1x128x8xbf16>, vector<1x128x8xf32> -> vector<1x128x8xf32>
    "tpu.trace_stop"() : () -> ()
    %6 = vector.shape_cast %5 : vector<1x128x8xf32> to vector<128x8xf32>
    %7 = arith.truncf %6 : vector<128x8xf32> to vector<128x8xbf16>
    %cst_9 = arith.constant dense<0.000000e+00> : vector<128x16xf32>
    %8 = tpu.matmul %7, %4, %cst_9 {dimension_numbers = #tpu.dot_dimension_numbers<[1], [0], [0], [1], [0, 0, 1, 1], [], []>} : vector<128x8xbf16>, vector<8x16xbf16>, vector<128x16xf32> -> vector<128x16xf32>
    %9 = vector.shape_cast %8 : vector<128x16xf32> to vector<1x128x16xf32>
    %10 = vector.shape_cast %3 : vector<1x16xf32> to vector<1x1x16xf32>
    %11 = vector.broadcast %10 : vector<1x1x16xf32> to vector<1x128x16xf32>
    %12 = arith.addf %9, %11 : vector<1x128x16xf32>
    %cst_10 = arith.constant 0.000000e+00 : f32
    %13 = vector.broadcast %cst_10 : f32 to vector<1x128x16xf32>
    %14 = arith.maximumf %12, %13 : vector<1x128x16xf32>
    %c0_11 = arith.constant 0 : index
    %c0_12 = arith.constant 0 : index
    %15 = vector.load %arg5[%c0_11, %c0_12] : memref<16x32xf32, #tpu.memory_space<vmem>>, vector<16x32xf32>
    %c0_13 = arith.constant 0 : index
    %c0_14 = arith.constant 0 : index
    %16 = vector.load %arg6[%c0_13, %c0_14] : memref<1x32xf32, #tpu.memory_space<vmem>>, vector<1x32xf32>
    %17 = arith.truncf %15 : vector<16x32xf32> to vector<16x32xbf16>
    %18 = arith.truncf %14 : vector<1x128x16xf32> to vector<1x128x16xbf16>
    "tpu.trace_start"() <{level = 10 : i32, message = "bnm,bmd->bnd"}> : () -> ()
    %cst_15 = arith.constant dense<0.000000e+00> : vector<1x128x16xf32>
    %19 = tpu.matmul %0, %18, %cst_15 {dimension_numbers = #tpu.dot_dimension_numbers<[2], [1], [1], [2], [0, 0, 0, 1, 1, 2], [0], [0]>} : vector<1x128x128xbf16>, vector<1x128x16xbf16>, vector<1x128x16xf32> -> vector<1x128x16xf32>
    "tpu.trace_stop"() : () -> ()
    %20 = vector.shape_cast %19 : vector<1x128x16xf32> to vector<128x16xf32>
    %21 = arith.truncf %20 : vector<128x16xf32> to vector<128x16xbf16>
    %cst_16 = arith.constant dense<0.000000e+00> : vector<128x32xf32>
    %22 = tpu.matmul %21, %17, %cst_16 {dimension_numbers = #tpu.dot_dimension_numbers<[1], [0], [0], [1], [0, 0, 1, 1], [], []>} : vector<128x16xbf16>, vector<16x32xbf16>, vector<128x32xf32> -> vector<128x32xf32>
    %23 = vector.shape_cast %22 : vector<128x32xf32> to vector<1x128x32xf32>
    %24 = vector.shape_cast %16 : vector<1x32xf32> to vector<1x1x32xf32>
    %25 = vector.broadcast %24 : vector<1x1x32xf32> to vector<1x128x32xf32>
    %26 = arith.addf %23, %25 : vector<1x128x32xf32>
    %cst_17 = arith.constant 0.000000e+00 : f32
    %27 = vector.broadcast %cst_17 : f32 to vector<1x128x32xf32>
    %28 = arith.maximumf %26, %27 : vector<1x128x32xf32>
    %c0_18 = arith.constant 0 : index
    %c0_19 = arith.constant 0 : index
    %c0_20 = arith.constant 0 : index
    %29 = vector.load %arg7[%c0_18, %c0_19, %c0_20] : memref<1x128x32xf32, #tpu.memory_space<vmem>>, vector<1x128x32xf32>
    tpu.vector_store %arg7[%c0_18, %c0_19, %c0_20], %28 {strides = array<i32>} : memref<1x128x32xf32, #tpu.memory_space<vmem>>, vector<1x128x32xf32>,
    return
  }
  func.func @transform_0(%arg0: i32) -> (i32, i32, i32) {
    %c0_i32 = arith.constant 0 : i32
    %c0_i32_0 = arith.constant 0 : i32
    %c0_i32_1 = arith.constant 0 : i32
    return %arg0, %c0_i32, %c0_i32_0 : i32, i32, i32
  }
  func.func @transform_1(%arg0: i32) -> (i32, i32, i32) {
    %c0_i32 = arith.constant 0 : i32
    %c0_i32_0 = arith.constant 0 : i32
    %c0_i32_1 = arith.constant 0 : i32
    return %arg0, %c0_i32, %c0_i32_0 : i32, i32, i32
  }
  func.func @transform_2(%arg0: i32) -> (i32, i32) {
    %c0_i32 = arith.constant 0 : i32
    %c0_i32_0 = arith.constant 0 : i32
    %c0_i32_1 = arith.constant 0 : i32
    return %c0_i32, %c0_i32_0 : i32, i32
  }
  func.func @transform_3(%arg0: i32) -> (i32, i32) {
    %c0_i32 = arith.constant 0 : i32
    %c0_i32_0 = arith.constant 0 : i32
    %c0_i32_1 = arith.constant 0 : i32
    return %c0_i32, %c0_i32_0 : i32, i32
  }
  func.func @transform_4(%arg0: i32) -> (i32, i32) {
    %c0_i32 = arith.constant 0 : i32
    %c0_i32_0 = arith.constant 0 : i32
    %c0_i32_1 = arith.constant 0 : i32
    return %c0_i32, %c0_i32_0 : i32, i32
  }
  func.func @transform_5(%arg0: i32) -> (i32, i32) {
    %c0_i32 = arith.constant 0 : i32
    %c0_i32_0 = arith.constant 0 : i32
    %c0_i32_1 = arith.constant 0 : i32
    return %c0_i32, %c0_i32_0 : i32, i32
  }
  func.func @transform_6(%arg0: i32) -> (i32, i32, i32) {
    %c0_i32 = arith.constant 0 : i32
    %c0_i32_0 = arith.constant 0 : i32
    %c0_i32_1 = arith.constant 0 : i32
    return %arg0, %c0_i32, %c0_i32_0 : i32, i32, i32
  }
}

</mosaic_0001>

<bundles_post_ra>
// kernel: gin_forward.1
= control target key start
LH: loop header
LB: loop body
LE: loop exit
PB: predicated region body
PF: predicated region fallthrough
CT: control target
= control target key end

     0   :  { %vm285_vm0 = vcmask 1043456   ;;  %vm260_vm1 = vcmask 64512   ;;  %vm541_vm2 = vcmask 130048   ;;  %vm701_vm3 = vcmask 261120   ;;  %s1141_s1 = inlined_call_operand.vmem [shape: bf16[1,128,8], index: 1, kind: input, shape index: {}]   ;;  %s1142_s0 = inlined_call_operand.vmem [shape: bf16[1,128,128], index: 0, kind: input, shape index: {}]   ;;  %s1143_s2 = inlined_call_operand.vmem [shape: f32[8,16], index: 2, kind: input, shape index: {}]   ;;  %s1144_s4 = inlined_call_operand.vmem [shape: f32[16,32], index: 4, kind: input, shape index: {}]   ;;  %s1145_s3 = inlined_call_operand.vmem [shape: f32[1,16], index: 3, kind: input, shape index: {}]   ;;  %s1146_s5 = inlined_call_operand.vmem [shape: f32[1,32], index: 5, kind: input, shape index: {}]   ;;  %s1147_s6 = inlined_call_operand.vmem [shape: f32[1,128,32], index: 6, kind: output, shape index: {}]  }
   0x1   :  { %v909_v0 = vld [vmem:[%s1141_s1] sm:$0xff]   ;;  %v910_v1 = vld [vmem:[%s1141_s1 + $0x8] sm:$0xff]   ;;  %v911_v2 = vld [vmem:[%s1141_s1 + $0x10] sm:$0xff]  }
   0x2   :  { %806 = vmatprep.subr.bf16.mxu0 %v909_v0  ;;  %v912_v3 = vld [vmem:[%s1141_s1 + $0x18] sm:$0xff]   ;;  %v975_v4 = vld [vmem:[%s1142_s0] sm:$0xff]   ;;  %v914_v6 = vld [vmem:[%s1141_s1 + $0x28] sm:$0xff]  }
   0x3   :  { %807 = vmatpush3.bf16.msra.mxu0 %v909_v0  ;;  %822 = vmatprep.mubr.bf16.mxu0 %v975_v4  ;;  %v913_v5 = vld [vmem:[%s1141_s1 + $0x20] sm:$0xff]   ;;  %v915_v7 = vld [vmem:[%s1141_s1 + $0x30] sm:$0xff]   ;;  %v916_v8 = vld [vmem:[%s1141_s1 + $0x38] sm:$0xff]  }
   0x4   :  { %808 = vmatprep.subr.bf16.mxu0 %v910_v1  ;;  %v993_v9 = vld [vmem:[%s1142_s0 + $0x8] sm:$0xff]   ;;  %v998_v10 = vld [vmem:[%s1142_s0 + $0x10] sm:$0xff]   ;;  %v1005_v11 = vld [vmem:[%s1142_s0 + $0x18] sm:$0xff]  }
   0x5   :  { %v1010_v12 = vld [vmem:[%s1142_s0 + $0x20] sm:$0xff]   ;;  %v1017_v13 = vld [vmem:[%s1142_s0 + $0x28] sm:$0xff]   ;;  %v1022_v14 = vld [vmem:[%s1142_s0 + $0x30] sm:$0xff]  }
   0x6   :  { %v1029_v15 = vld [vmem:[%s1142_s0 + $0x38] sm:$0xff]   ;;  %v56_v16 = vld [vmem:[%s1143_s2] sm:$0xff]  ;;  %v425_v44 = vld [vmem:[%s1144_s4 + $0x8] sm:$0xff] }
   0x7   :  { %809 = vmatpush3.bf16.msra.mxu0 %v910_v1  ;;  %v58_v17 = vpack.c.bf16 %v56_v16, %v56_v16  ;;  %v424_v43 = vld [vmem:[%s1144_s4] sm:$0xff] }
   0x8   :  { %810 = vmatprep.subr.bf16.mxu0 %v911_v2  ;;  %v1050_v45 = vpack.c.bf16 %v425_v44, %v424_v43  ;;  %v746_v46 = vld [vmem:[%s1145_s3] ss:$0 sm:$0xff] }
   0x9   :  { %908 = vmatprep.subr.msk.bf16.mxu1 %vm285_vm0, %v58_v17  ;;  %v287_v18 = vsel %vm285_vm0, %v58_v17, 0 }
   0xa   :  { %839 = vmatpush3.bf16.msra.mxu1 %v287_v18 }
   0xb   :  { %811 = vmatpush3.bf16.msra.mxu0 %v911_v2 }
   0xc   :  { %812 = vmatprep.subr.bf16.mxu0 %v912_v3 }
   0xf   :  { %813 = vmatpush3.bf16.msra.mxu0 %v912_v3 }
  0x10   :  { %814 = vmatprep.subr.bf16.mxu0 %v913_v5 }
  0x13   :  { %815 = vmatpush3.bf16.msra.mxu0 %v913_v5 }
  0x14   :  { %816 = vmatprep.subr.bf16.mxu0 %v914_v6 }
  0x17   :  { %817 = vmatpush3.bf16.msra.mxu0 %v914_v6 }
  0x18   :  { %818 = vmatprep.subr.bf16.mxu0 %v915_v7 }
  0x1b   :  { %819 = vmatpush3.bf16.msra.mxu0 %v915_v7 }
  0x1c   :  { %820 = vmatprep.subr.bf16.mxu0 %v916_v8 }
  0x1f   :  { %821 = vmatpush3.bf16.msra.mxu0 %v916_v8 }
  0x20   :  { %888 = vmatprep.subr.bf16.mxu0 %v1050_v45 }
  0x22   :  { %823 = vmatmul.mubr.bf16.vlgmr.msra.gmra.mrb[0].mxu0 %v993_v9 }
  0x23   :  { %826 = vmatprep.mubr.bf16.mxu0 %v998_v10  ;;  %889 = vmatpush3.bf16.msra.mxu0 %v1050_v45 }
  0x2a   :  { %827 = vmatmul.mubr.bf16.gmra.mrb[4].mxu0 %v1005_v11 }
  0x2b   :  { %830 = vmatprep.mubr.bf16.mxu0 %v1010_v12 }
  0x32   :  { %831 = vmatmul.mubr.bf16.gmra.mrb[8].mxu0 %v1017_v13 }
  0x33   :  { %834 = vmatprep.mubr.bf16.mxu0 %v1022_v14 }
  0x3a   :  { %835 = vmatmul.mubr.bf16.gmra.mrb[12].mxu0 %v1029_v15 }
  0xf5   :  { %v824_v19 = vpop.f32.mrb[0].mxu0 }
  0xf6   :  { %v189_v20 = vpop.f32.mrb[1].mxu0 }
  0xf7   :  { %v825_v21 = vpop.f32.mrb[2].mxu0 }
  0xf8   :  { %v253_v22 = vpack.c.bf16 %v825_v21, %v824_v19  ;;  %v192_v23 = vpop.f32.mrb[3].mxu0 }
  0xf9   :  { %v252_v24 = vpack.c.bf16 %v192_v23, %v189_v20 }
  0xfb   :  { %840 = vmatprep.mubr.msk.bf16.mxu1 %vm260_vm1, %v252_v24 }
  0xfc   :  { %841 = vmatmul.mubr.msk.bf16.vlgmr.msra.gmra.mrb[0].mxu1 %vm260_vm1, %v253_v22 }
  0xfd   :  { %v828_v25 = vpop.f32.mrb[4].mxu0 }
  0xfe   :  { %v205_v26 = vpop.f32.mrb[5].mxu0 }
  0xff   :  { %v829_v27 = vpop.f32.mrb[6].mxu0 }
 0x100   :  { %v255_v28 = vpack.c.bf16 %v829_v27, %v828_v25  ;;  %v208_v29 = vpop.f32.mrb[7].mxu0 }
 0x101   :  { %v254_v30 = vpack.c.bf16 %v208_v29, %v205_v26 }
 0x103   :  { %844 = vmatprep.mubr.msk.bf16.mxu1 %vm260_vm1, %v254_v30 }
 0x104   :  { %845 = vmatmul.mubr.msk.bf16.gmra.mrb[4].mxu1 %vm260_vm1, %v255_v28 }
 0x105   :  { %v832_v31 = vpop.f32.mrb[8].mxu0 }
 0x106   :  { %v221_v32 = vpop.f32.mrb[9].mxu0 }
 0x107   :  { %v833_v33 = vpop.f32.mrb[10].mxu0 }
 0x108   :  { %v257_v34 = vpack.c.bf16 %v833_v33, %v832_v31  ;;  %v224_v35 = vpop.f32.mrb[11].mxu0 }
 0x109   :  { %v256_v36 = vpack.c.bf16 %v224_v35, %v221_v32 }
 0x10b   :  { %848 = vmatprep.mubr.msk.bf16.mxu1 %vm260_vm1, %v256_v36 }
 0x10c   :  { %849 = vmatmul.mubr.msk.bf16.gmra.mrb[8].mxu1 %vm260_vm1, %v257_v34 }
 0x10d   :  { %v836_v37 = vpop.f32.mrb[12].mxu0 }
 0x10e   :  { %v237_v38 = vpop.f32.mrb[13].mxu0 }
 0x10f   :  { %v837_v39 = vpop.f32.mrb[14].mxu0 }
 0x110   :  { %v259_v40 = vpack.c.bf16 %v837_v39, %v836_v37  ;;  %v240_v41 = vpop.f32.mrb[15].mxu0 }
 0x111   :  { %v258_v42 = vpack.c.bf16 %v240_v41, %v237_v38 }
 0x113   :  { %852 = vmatprep.mubr.msk.bf16.mxu1 %vm260_vm1, %v258_v42 }
 0x114   :  { %853 = vmatmul.mubr.msk.bf16.gmra.mrb[12].mxu1 %vm260_vm1, %v259_v40 }
 0x115   :  { %872 = vmatprep.mubr.bf16.mxu1 %v975_v4 }
 0x1cf   :  { %v842_v47 = vpop.f32.mrb[0].mxu1 }
 0x1d0   :  { %v394_v48 = vadd.f32 %v842_v47, %v746_v46  ;;  %v323_v49 = vpop.f32.mrb[1].mxu1 }
 0x1d1   :  { %v392_v50 = vadd.f32 %v746_v46, %v323_v49  ;;  %v843_v51 = vpop.f32.mrb[2].mxu1 }
 0x1d2   :  { %v395_v52 = vadd.f32 %v843_v51, %v746_v46  ;;  %v326_v53 = vpop.f32.mrb[3].mxu1  ;;  %v410_v55 = vmax.f32 %v394_v48, 0.0 }
 0x1d3   :  { %v393_v54 = vadd.f32 %v746_v46, %v326_v53  ;;  %v408_v57 = vmax.f32 %v392_v50, 0.0 }
 0x1d4   :  { %v411_v56 = vmax.f32 %v395_v52, 0.0 }
 0x1d5   :  { %v409_v58 = vmax.f32 %v393_v54, 0.0 }
 0x1d6   :  { %v429_v59 = vpack.c.bf16 %v411_v56, %v410_v55 }
 0x1d7   :  { %v428_v60 = vpack.c.bf16 %v409_v58, %v408_v57  ;;  %v846_v61 = vpop.f32.mrb[4].mxu1 }
 0x1d8   :  { %v398_v62 = vadd.f32 %v846_v61, %v746_v46  ;;  %v339_v63 = vpop.f32.mrb[5].mxu1 }
 0x1d9   :  { %v396_v0 = vadd.f32 %v746_v46, %v339_v63  ;;  %v847_v1 = vpop.f32.mrb[6].mxu1  ;;  %856 = vmatprep.subr.bf16.mxu1 %v428_v60  ;;  %v755_v63 = vld [vmem:[%s1146_s5] ss:$0 sm:$0xff] }
 0x1da   :  { %v399_v2 = vadd.f32 %v847_v1, %v746_v46  ;;  %v342_v3 = vpop.f32.mrb[7].mxu1  ;;  %857 = vmatpush3.bf16.msra.mxu1 %v428_v60  ;;  %v414_v5 = vmax.f32 %v398_v62, 0.0 }
 0x1db   :  { %v397_v4 = vadd.f32 %v746_v46, %v342_v3  ;;  %858 = vmatprep.subr.bf16.mxu1 %v429_v59  ;;  %v412_v7 = vmax.f32 %v396_v0, 0.0 }
 0x1dc   :  { %v415_v6 = vmax.f32 %v399_v2, 0.0 }
 0x1dd   :  { %v413_v8 = vmax.f32 %v397_v4, 0.0 }
 0x1de   :  { %v431_v16 = vpack.c.bf16 %v415_v6, %v414_v5  ;;  %859 = vmatpush3.bf16.msra.mxu1 %v429_v59 }
 0x1df   :  { %v430_v17 = vpack.c.bf16 %v413_v8, %v412_v7  ;;  %v850_v18 = vpop.f32.mrb[8].mxu1 }
 0x1e0   :  { %v402_v19 = vadd.f32 %v850_v18, %v746_v46  ;;  %v355_v20 = vpop.f32.mrb[9].mxu1 }
 0x1e1   :  { %v400_v21 = vadd.f32 %v746_v46, %v355_v20  ;;  %v851_v22 = vpop.f32.mrb[10].mxu1  ;;  %860 = vmatprep.subr.bf16.mxu1 %v430_v17 }
 0x1e2   :  { %v403_v23 = vadd.f32 %v851_v22, %v746_v46  ;;  %v358_v24 = vpop.f32.mrb[11].mxu1  ;;  %861 = vmatpush3.bf16.msra.mxu1 %v430_v17  ;;  %v418_v26 = vmax.f32 %v402_v19, 0.0 }
 0x1e3   :  { %v401_v25 = vadd.f32 %v746_v46, %v358_v24  ;;  %862 = vmatprep.subr.bf16.mxu1 %v431_v16  ;;  %v416_v28 = vmax.f32 %v400_v21, 0.0 }
 0x1e4   :  { %v419_v27 = vmax.f32 %v403_v23, 0.0 }
 0x1e5   :  { %v417_v29 = vmax.f32 %v401_v25, 0.0 }
 0x1e6   :  { %v433_v30 = vpack.c.bf16 %v419_v27, %v418_v26  ;;  %863 = vmatpush3.bf16.msra.mxu1 %v431_v16 }
 0x1e7   :  { %v432_v31 = vpack.c.bf16 %v417_v29, %v416_v28  ;;  %v854_v32 = vpop.f32.mrb[12].mxu1 }
 0x1e8   :  { %v406_v33 = vadd.f32 %v854_v32, %v746_v46  ;;  %v371_v34 = vpop.f32.mrb[13].mxu1 }
 0x1e9   :  { %v404_v35 = vadd.f32 %v746_v46, %v371_v34  ;;  %v855_v36 = vpop.f32.mrb[14].mxu1  ;;  %864 = vmatprep.subr.bf16.mxu1 %v432_v31 }
 0x1ea   :  { %v407_v37 = vadd.f32 %v855_v36, %v746_v46  ;;  %v374_v38 = vpop.f32.mrb[15].mxu1  ;;  %865 = vmatpush3.bf16.msra.mxu1 %v432_v31  ;;  %v422_v40 = vmax.f32 %v406_v33, 0.0 }
 0x1eb   :  { %v405_v39 = vadd.f32 %v746_v46, %v374_v38  ;;  %866 = vmatprep.subr.bf16.mxu1 %v433_v30  ;;  %v420_v42 = vmax.f32 %v404_v35, 0.0 }
 0x1ec   :  { %v423_v41 = vmax.f32 %v407_v37, 0.0 }
 0x1ed   :  { %v421_v43 = vmax.f32 %v405_v39, 0.0 }
 0x1ee   :  { %v435_v44 = vpack.c.bf16 %v423_v41, %v422_v40  ;;  %867 = vmatpush3.bf16.msra.mxu1 %v433_v30 }
 0x1ef   :  { %v434_v47 = vpack.c.bf16 %v421_v43, %v420_v42 }
 0x1f1   :  { %868 = vmatprep.subr.bf16.mxu1 %v434_v47 }
 0x1f2   :  { %869 = vmatpush3.bf16.msra.mxu1 %v434_v47 }
 0x1f3   :  { %870 = vmatprep.subr.bf16.mxu1 %v435_v44 }
 0x1f6   :  { %871 = vmatpush3.bf16.msra.mxu1 %v435_v44 }
 0x1f7   :  { %906 = vmatprep.subr.bf16.mxu1 %v1050_v45 }
 0x1f9   :  { %873 = vmatmul.mubr.bf16.vlgmr.msra.gmra.mrb[16].mxu1 %v993_v9 }
 0x1fa   :  { %876 = vmatprep.mubr.bf16.mxu1 %v998_v10  ;;  %907 = vmatpush3.bf16.msra.mxu1 %v1050_v45 }
 0x201   :  { %877 = vmatmul.mubr.bf16.gmra.mrb[20].mxu1 %v1005_v11 }
 0x202   :  { %880 = vmatprep.mubr.bf16.mxu1 %v1010_v12 }
 0x209   :  { %881 = vmatmul.mubr.bf16.gmra.mrb[24].mxu1 %v1017_v13 }
 0x20a   :  { %884 = vmatprep.mubr.bf16.mxu1 %v1022_v14 }
 0x211   :  { %885 = vmatmul.mubr.bf16.gmra.mrb[28].mxu1 %v1029_v15 }
 0x2cc   :  { %v874_v46 = vpop.f32.mrb[16].mxu1 }
 0x2cd   :  { %v470_v48 = vpop.f32.mrb[17].mxu1 }
 0x2ce   :  { %v875_v49 = vpop.f32.mrb[18].mxu1 }
 0x2cf   :  { %v534_v50 = vpack.c.bf16 %v875_v49, %v874_v46  ;;  %v473_v51 = vpop.f32.mrb[19].mxu1 }
 0x2d0   :  { %v533_v9 = vpack.c.bf16 %v473_v51, %v470_v48 }
 0x2d2   :  { %890 = vmatprep.mubr.msk.bf16.mxu0 %vm541_vm2, %v533_v9 }
 0x2d3   :  { %891 = vmatmul.mubr.msk.bf16.vlgmr.msra.gmra.mrb[16].mxu0 %vm541_vm2, %v534_v50 }
 0x2d4   :  { %v878_v10 = vpop.f32.mrb[20].mxu1 }
 0x2d5   :  { %v486_v11 = vpop.f32.mrb[21].mxu1 }
 0x2d6   :  { %v879_v12 = vpop.f32.mrb[22].mxu1 }
 0x2d7   :  { %v536_v45 = vpack.c.bf16 %v879_v12, %v878_v10  ;;  %v489_v13 = vpop.f32.mrb[23].mxu1 }
 0x2d8   :  { %v535_v52 = vpack.c.bf16 %v489_v13, %v486_v11 }
 0x2da   :  { %894 = vmatprep.mubr.msk.bf16.mxu0 %vm541_vm2, %v535_v52 }
 0x2db   :  { %895 = vmatmul.mubr.msk.bf16.gmra.mrb[20].mxu0 %vm541_vm2, %v536_v45 }
 0x2dc   :  { %v882_v14 = vpop.f32.mrb[24].mxu1 }
 0x2dd   :  { %v502_v15 = vpop.f32.mrb[25].mxu1 }
 0x2de   :  { %v883_v53 = vpop.f32.mrb[26].mxu1 }
 0x2df   :  { %v538_v54 = vpack.c.bf16 %v883_v53, %v882_v14  ;;  %v505_v55 = vpop.f32.mrb[27].mxu1 }
 0x2e0   :  { %v537_v56 = vpack.c.bf16 %v505_v55, %v502_v15 }
 0x2e2   :  { %898 = vmatprep.mubr.msk.bf16.mxu0 %vm541_vm2, %v537_v56 }
 0x2e3   :  { %899 = vmatmul.mubr.msk.bf16.gmra.mrb[24].mxu0 %vm541_vm2, %v538_v54 }
 0x2e4   :  { %v886_v57 = vpop.f32.mrb[28].mxu1 }
 0x2e5   :  { %v518_v58 = vpop.f32.mrb[29].mxu1 }
 0x2e6   :  { %v887_v59 = vpop.f32.mrb[30].mxu1 }
 0x2e7   :  { %v540_v60 = vpack.c.bf16 %v887_v59, %v886_v57  ;;  %v521_v61 = vpop.f32.mrb[31].mxu1 }
 0x2e8   :  { %v539_v62 = vpack.c.bf16 %v521_v61, %v518_v58 }
 0x2ea   :  { %902 = vmatprep.mubr.msk.bf16.mxu1 %vm541_vm2, %v539_v62 }
 0x2eb   :  { %903 = vmatmul.mubr.msk.bf16.vlgmr.msra.gmra.mrb[32].mxu1 %vm541_vm2, %v540_v60 }
 0x3a6   :  { %v892_v0 = vpop.f32.mrb[16].mxu0 }
 0x3a7   :  { %v671_v1 = vadd.f32 %v892_v0, %v755_v63  ;;  %v600_v2 = vpop.f32.mrb[17].mxu0 }
 0x3a8   :  { %v669_v3 = vadd.f32 %v755_v63, %v600_v2  ;;  %v893_v4 = vpop.f32.mrb[18].mxu0 }
 0x3a9   :  { %v687_v5 = vmax.f32 %v671_v1, 0.0  ;;  %v672_v6 = vadd.f32 %v893_v4, %v755_v63  ;;  %v603_v7 = vpop.f32.mrb[19].mxu0 }
 0x3aa   :  { %v685_v8 = vmax.f32 %v669_v3, 0.0  ;;  %v670_v16 = vadd.f32 %v755_v63, %v603_v7 }
 0x3ab   :  { %704 = vst.msk [vmem:[%s1147_s6 + $0x10] sm:$0xff] %vm701_vm3, %v687_v5  ;;  %v688_v17 = vmax.f32 %v672_v6, 0.0 }
 0x3ac   :  { %702 = vst.msk [vmem:[%s1147_s6] sm:$0xff] %vm701_vm3, %v685_v8  ;;  %v686_v18 = vmax.f32 %v670_v16, 0.0 }
 0x3ad   :  { %705 = vst.msk [vmem:[%s1147_s6 + $0x18] sm:$0xff] %vm701_vm3, %v688_v17 }
 0x3ae   :  { %703 = vst.msk [vmem:[%s1147_s6 + $0x8] sm:$0xff] %vm701_vm3, %v686_v18  ;;  %v896_v19 = vpop.f32.mrb[20].mxu0 }
 0x3af   :  { %v675_v20 = vadd.f32 %v896_v19, %v755_v63  ;;  %v616_v21 = vpop.f32.mrb[21].mxu0 }
 0x3b0   :  { %v673_v22 = vadd.f32 %v755_v63, %v616_v21  ;;  %v897_v23 = vpop.f32.mrb[22].mxu0 }
 0x3b1   :  { %v691_v24 = vmax.f32 %v675_v20, 0.0  ;;  %v676_v25 = vadd.f32 %v897_v23, %v755_v63  ;;  %v619_v26 = vpop.f32.mrb[23].mxu0 }
 0x3b2   :  { %v689_v27 = vmax.f32 %v673_v22, 0.0  ;;  %v674_v28 = vadd.f32 %v755_v63, %v619_v26 }
 0x3b3   :  { %708 = vst.msk [vmem:[%s1147_s6 + $0x30] sm:$0xff] %vm701_vm3, %v691_v24  ;;  %v692_v29 = vmax.f32 %v676_v25, 0.0 }
 0x3b4   :  { %706 = vst.msk [vmem:[%s1147_s6 + $0x20] sm:$0xff] %vm701_vm3, %v689_v27  ;;  %v690_v30 = vmax.f32 %v674_v28, 0.0 }
 0x3b5   :  { %709 = vst.msk [vmem:[%s1147_s6 + $0x38] sm:$0xff] %vm701_vm3, %v692_v29 }
 0x3b6   :  { %707 = vst.msk [vmem:[%s1147_s6 + $0x28] sm:$0xff] %vm701_vm3, %v690_v30  ;;  %v900_v31 = vpop.f32.mrb[24].mxu0 }
 0x3b7   :  { %v679_v32 = vadd.f32 %v900_v31, %v755_v63  ;;  %v632_v33 = vpop.f32.mrb[25].mxu0 }
 0x3b8   :  { %v677_v34 = vadd.f32 %v755_v63, %v632_v33  ;;  %v901_v35 = vpop.f32.mrb[26].mxu0 }
 0x3b9   :  { %v695_v36 = vmax.f32 %v679_v32, 0.0  ;;  %v680_v37 = vadd.f32 %v901_v35, %v755_v63  ;;  %v635_v38 = vpop.f32.mrb[27].mxu0 }
 0x3ba   :  { %v693_v39 = vmax.f32 %v677_v34, 0.0  ;;  %v678_v40 = vadd.f32 %v755_v63, %v635_v38 }
 0x3bb   :  { %712 = vst.msk [vmem:[%s1147_s6 + $0x50] sm:$0xff] %vm701_vm3, %v695_v36  ;;  %v696_v41 = vmax.f32 %v680_v37, 0.0 }
 0x3bc   :  { %710 = vst.msk [vmem:[%s1147_s6 + $0x40] sm:$0xff] %vm701_vm3, %v693_v39  ;;  %v694_v42 = vmax.f32 %v678_v40, 0.0 }
 0x3bd   :  { %713 = vst.msk [vmem:[%s1147_s6 + $0x58] sm:$0xff] %vm701_vm3, %v696_v41 }
 0x3be   :  { %711 = vst.msk [vmem:[%s1147_s6 + $0x48] sm:$0xff] %vm701_vm3, %v694_v42  ;;  %v904_v43 = vpop.f32.mrb[32].mxu1 }
 0x3bf   :  { %v683_v44 = vadd.f32 %v904_v43, %v755_v63  ;;  %v648_v47 = vpop.f32.mrb[33].mxu1 }
 0x3c0   :  { %v681_v46 = vadd.f32 %v755_v63, %v648_v47  ;;  %v905_v48 = vpop.f32.mrb[34].mxu1 }
 0x3c1   :  { %v699_v49 = vmax.f32 %v683_v44, 0.0  ;;  %v684_v50 = vadd.f32 %v905_v48, %v755_v63  ;;  %v651_v51 = vpop.f32.mrb[35].mxu1 }
 0x3c2   :  { %v697_v9 = vmax.f32 %v681_v46, 0.0  ;;  %v682_v10 = vadd.f32 %v755_v63, %v651_v51 }
 0x3c3   :  { %716 = vst.msk [vmem:[%s1147_s6 + $0x70] sm:$0xff] %vm701_vm3, %v699_v49  ;;  %v700_v11 = vmax.f32 %v684_v50, 0.0 }
 0x3c4   :  { %714 = vst.msk [vmem:[%s1147_s6 + $0x60] sm:$0xff] %vm701_vm3, %v697_v9  ;;  %v698_v12 = vmax.f32 %v682_v10, 0.0 }
 0x3c5   :  { %717 = vst.msk [vmem:[%s1147_s6 + $0x78] sm:$0xff] %vm701_vm3, %v700_v11 }
 0x3c6   :  { %715 = vst.msk [vmem:[%s1147_s6 + $0x68] sm:$0xff] %vm701_vm3, %v698_v12 }

</bundles_post_ra>
